<compile_context>
chip_gen: v7x
topology: tpu7x:2x2x1
jax: 0.10.0
libtpu: 0.0.40
codegen_flags: <defaults>
</compile_context>

<pallas_src>
import jax
import jax.numpy as jnp
from jax.experimental import pallas as pl
from jax.experimental.pallas import tpu as pltpu


def light_conv_bn_relu6(x_nchw, w_dw, w_pw, gamma, beta, running_mean,
                        running_var, *, eps=1e-5, padding=1):
    """Forward pass of LightConvBnReLU6 (stride=1, dilation=1).

    x_nchw: (N, Cin, H, W)      -- PyTorch layout
    w_dw:   (Cin, 1, K, K)      -- depthwise conv weight (groups=Cin, no bias)
    w_pw:   (Cout, Cin, 1, 1)   -- pointwise conv weight (no bias)
    gamma, beta, running_mean, running_var: (Cout,)  -- BatchNorm2d buffers
    returns (N, Cout, H, W)
    """
    N, Cin, H, W = x_nchw.shape
    Cout = w_pw.shape[0]
    K = w_dw.shape[-1]
    p = padding
    Hp, Wp = H + 2 * p, W + 2 * p
    wc_in = W * Cin
    wc_out = W * Cout

    # ---- layout glue (NCHW -> lane-flattened NHWC, NO padding / extra HBM pass) --
    x_nhwc = jnp.transpose(x_nchw, (0, 2, 3, 1))          # (N, H, W, Cin)
    x_flat = x_nhwc.reshape(N, H, wc_in)                  # (W, C) flattened on lanes

    # Depthwise weights: one row per tap (kh*K + kw), tiled over W on the lane axis
    # and pre-broadcast over the H sublanes so the kernel does zero broadcasts.
    wdw_taps = jnp.transpose(w_dw[:, 0, :, :], (1, 2, 0)).reshape(K * K, Cin)
    wdw_tiled = jnp.tile(wdw_taps.astype(jnp.float32), (1, W))          # (K*K, W*Cin)
    wdw_bcast = jnp.broadcast_to(wdw_tiled[:, None, :], (K * K, H, wc_in))

    # Pointwise 1x1 conv in the flattened (W*C) lane layout: block-diagonal matmul
    # with W copies of the (Cin, Cout) weight.  Fold the eval-mode BN scale into its
    # columns and store it in bf16 for the MXU (accumulation stays f32).
    wpw_mat = jnp.transpose(w_pw[:, :, 0, 0], (1, 0)).astype(jnp.float32)  # (Cin, Cout)
    wpw_big = jnp.kron(jnp.eye(W, dtype=jnp.float32), wpw_mat)             # (W*Cin, W*Cout)
    scale = (gamma / jnp.sqrt(running_var + eps)).astype(jnp.float32)
    bias = (beta - running_mean * scale).astype(jnp.float32)
    scale_t = jnp.tile(scale, W).reshape(1, wc_out)
    bias_t = jnp.tile(bias, W).reshape(1, wc_out)
    wpw_scaled = (wpw_big * scale_t).astype(jnp.bfloat16)                  # BN scale folded

    def kernel(x_ref, wdw_ref, wpw_ref, bias_ref, o_ref, xpad_ref):
        # In-kernel zero padding: zero the tiny (Hp, Wp*Cin) scratch and write the
        # image into its interior (replaces the wrapper jnp.pad HBM round trip).
        xpad_ref[...] = jnp.zeros_like(xpad_ref)
        xpad_ref[pl.ds(p, H), pl.ds(p * Cin, wc_in)] = x_ref[0].astype(jnp.float32)
        x = xpad_ref[...]                                   # (Hp, Wp*Cin) f32

        # Depthwise KxK.  Outer kw: 3 lane-shifted column views (XLU work done once
        # per kw); inner kh: cheap sublane row slices; taps are pre-broadcast, so the
        # inner body is pure VPU multiply-add.  f32 math (v5e VPU has no bf16).
        acc = jnp.zeros((H, wc_in), jnp.float32)
        for kw in range(K):
            col = x[:, kw * Cin:kw * Cin + wc_in]           # (Hp, W*Cin)
            for kh in range(K):
                acc = acc + col[kh:kh + H, :] * wdw_ref[kh * K + kw]

        # Pointwise 1x1 conv == block-diagonal matmul on the MXU, bf16 operands /
        # f32 accumulation; output last dim (W*Cout) is lane-dense -> unmasked vst.
        y = jnp.dot(acc.astype(jnp.bfloat16), wpw_ref[...],
                    preferred_element_type=jnp.float32)

        # BN scale already folded into the weight columns; add bias, ReLU6, store.
        y = y + bias_ref[...]
        y = jnp.clip(y, 0.0, 6.0)
        o_ref[0] = y.astype(o_ref.dtype)

    # Derive the VMEM budget from the actual chip (v7x has only 64 MiB per TC).
    try:
        vmem_cap = int(pltpu.get_tpu_info().vmem_capacity_bytes)
    except Exception:
        vmem_cap = 64 * 1024 * 1024
    vmem_limit = max(16 * 1024 * 1024, min(vmem_cap // 2, 96 * 1024 * 1024))

    out_flat = pl.pallas_call(
        kernel,
        out_shape=jax.ShapeDtypeStruct((N, H, wc_out), x_nchw.dtype),
        grid=(N,),
        in_specs=[
            # One full image per grid step; Pallas auto double-buffers this block,
            # overlapping the next image's HBM fetch with the current compute.
            pl.BlockSpec((1, H, wc_in), lambda n: (n, 0, 0)),
            pl.BlockSpec((K * K, H, wc_in), lambda n: (0, 0, 0)),   # depthwise taps
            pl.BlockSpec((wc_in, wc_out), lambda n: (0, 0)),        # bf16 block-diag pw
            pl.BlockSpec((1, wc_out), lambda n: (0, 0)),            # folded BN bias
        ],
        out_specs=pl.BlockSpec((1, H, wc_out), lambda n: (n, 0, 0)),
        scratch_shapes=[pltpu.VMEM((Hp, Wp * Cin), jnp.float32)],   # padded image
        compiler_params=pltpu.CompilerParams(
            dimension_semantics=("parallel",),                      # one image per TC
            vmem_limit_bytes=vmem_limit,
        ),
    )(x_flat, wdw_bcast, wpw_scaled, bias_t)

    out_nhwc = out_flat.reshape(N, H, W, Cout)
    return jnp.transpose(out_nhwc, (0, 3, 1, 2))                    # back to NCHW


def _reference(x_nchw, w_dw, w_pw, gamma, beta, rmean, rvar, eps=1e-5):
    """Pure-JAX reference (lax convs) for validation."""
    Cin = x_nchw.shape[1]
    dn = jax.lax.conv_dimension_numbers(x_nchw.shape, w_dw.shape,
                                        ('NCHW', 'OIHW', 'NCHW'))
    y = jax.lax.conv_general_dilated(
        x_nchw.astype(jnp.float32), w_dw.astype(jnp.float32),
        window_strides=(1, 1), padding=((1, 1), (1, 1)),
        dimension_numbers=dn, feature_group_count=Cin)
    dn2 = jax.lax.conv_dimension_numbers(y.shape, w_pw.shape,
                                         ('NCHW', 'OIHW', 'NCHW'))
    y = jax.lax.conv_general_dilated(
        y, w_pw.astype(jnp.float32), window_strides=(1, 1),
        padding=((0, 0), (0, 0)), dimension_numbers=dn2)
    s = gamma / jnp.sqrt(rvar + eps)
    b = beta - rmean * s
    y = y * s[None, :, None, None] + b[None, :, None, None]
    return jnp.clip(y, 0.0, 6.0)


if __name__ == "__main__":
    N, Cin, H, W = 2, 4, 16, 16
    Cout, K = 8, 3

    key = jax.random.PRNGKey(0)
    k1, k2, k3, k4, k5 = jax.random.split(key, 5)

    x = jax.random.normal(k1, (N, Cin, H, W), dtype=jnp.float32)
    w_dw = jax.random.normal(k2, (Cin, 1, K, K), dtype=jnp.float32) * 0.2
    w_pw = jax.random.normal(k3, (Cout, Cin, 1, 1), dtype=jnp.float32) * 0.2
    # BatchNorm2d parameters/buffers, perturbed slightly so BN is non-trivial.
    gamma = jnp.ones((Cout,), jnp.float32) + 0.1 * jax.random.normal(k4, (Cout,))
    beta = 0.1 * jax.random.normal(k5, (Cout,))
    running_mean = jnp.zeros((Cout,), jnp.float32)
    running_var = jnp.ones((Cout,), jnp.float32)

    out = light_conv_bn_relu6(x, w_dw, w_pw, gamma, beta,
                              running_mean, running_var)
    out = jax.block_until_ready(out)

    ref = _reference(x, w_dw, w_pw, gamma, beta, running_mean, running_var)
    assert out.shape == (N, Cout, H, W)
    # bf16 MXU operands -> tolerance loosened vs the all-f32 version.
    assert jnp.allclose(out, ref, atol=3e-2, rtol=3e-2), "mismatch vs reference"

    print("KERNEL_OK")
</pallas_src>

<mosaic_0001>
module attributes {stable_mosaic.version = 11 : i64} {
  func.func @kernel(%arg0: i32, %arg1: memref<1x16x64xf32, #tpu.memory_space<vmem>>, %arg2: memref<9x16x64xf32, #tpu.memory_space<vmem>>, %arg3: memref<64x128xbf16, #tpu.memory_space<vmem>>, %arg4: memref<1x128xf32, #tpu.memory_space<vmem>>, %arg5: memref<1x16x128xf32, #tpu.memory_space<vmem>>, %arg6: memref<18x72xf32, #tpu.memory_space<vmem>>) attributes {dimension_semantics = [#tpu.dimension_semantics<parallel>], iteration_bounds = array<i64: 2>, scalar_prefetch = 0 : i64, scratch_operands = 1 : i64, tpu.core_type = #tpu.core_type<tc>, window_params = [{transform_indices = @transform_0, window_bounds = array<i64: 1, 16, 64>}, {pipeline_mode = #tpu.pipeline_mode<synchronous>, transform_indices = @transform_1, window_bounds = array<i64: 9, 16, 64>}, {pipeline_mode = #tpu.pipeline_mode<synchronous>, transform_indices = @transform_2, window_bounds = array<i64: 64, 128>}, {pipeline_mode = #tpu.pipeline_mode<synchronous>, transform_indices = @transform_3, window_bounds = array<i64: 1, 128>}, {transform_indices = @transform_4, window_bounds = array<i64: 1, 16, 128>}]} {
    %cst = arith.constant 0.000000e+00 : f32
    %0 = vector.broadcast %cst : f32 to vector<18x72xf32>
    %c0 = arith.constant 0 : index
    %c0_0 = arith.constant 0 : index
    %1 = vector.load %arg6[%c0, %c0_0] : memref<18x72xf32, #tpu.memory_space<vmem>>, vector<18x72xf32>
    tpu.vector_store %arg6[%c0, %c0_0], %0 {strides = array<i32>} : memref<18x72xf32, #tpu.memory_space<vmem>>, vector<18x72xf32>,
    %c0_1 = arith.constant 0 : index
    %c0_2 = arith.constant 0 : index
    %c0_3 = arith.constant 0 : index
    %2 = vector.load %arg1[%c0_1, %c0_2, %c0_3] : memref<1x16x64xf32, #tpu.memory_space<vmem>>, vector<1x16x64xf32>
    %3 = vector.shape_cast %2 : vector<1x16x64xf32> to vector<16x64xf32>
    %c1 = arith.constant 1 : index
    %c4 = arith.constant 4 : index
    %4 = vector.load %arg6[%c1, %c4] : memref<18x72xf32, #tpu.memory_space<vmem>>, vector<16x64xf32>
    tpu.vector_store %arg6[%c1, %c4], %3 {strides = array<i32>} : memref<18x72xf32, #tpu.memory_space<vmem>>, vector<16x64xf32>,
    %c0_4 = arith.constant 0 : index
    %c0_5 = arith.constant 0 : index
    %5 = vector.load %arg6[%c0_4, %c0_5] : memref<18x72xf32, #tpu.memory_space<vmem>>, vector<18x72xf32>
    %cst_6 = arith.constant 0.000000e+00 : f32
    %6 = vector.broadcast %cst_6 : f32 to vector<16x64xf32>
    %7 = vector.extract_strided_slice %5 {offsets = [0, 0], sizes = [18, 64], strides = [1, 1]} : vector<18x72xf32> to vector<18x64xf32>
    %8 = vector.extract_strided_slice %7 {offsets = [0, 0], sizes = [16, 64], strides = [1, 1]} : vector<18x64xf32> to vector<16x64xf32>
    %c0_7 = arith.constant 0 : index
    %c0_8 = arith.constant 0 : index
    %c0_9 = arith.constant 0 : index
    %9 = vector.load %arg2[%c0_7, %c0_8, %c0_9] : memref<9x16x64xf32, #tpu.memory_space<vmem>>, vector<1x16x64xf32>
    %10 = vector.shape_cast %9 : vector<1x16x64xf32> to vector<16x64xf32>
    %11 = arith.mulf %8, %10 : vector<16x64xf32>
    %12 = arith.addf %6, %11 : vector<16x64xf32>
    %13 = vector.extract_strided_slice %7 {offsets = [1, 0], sizes = [16, 64], strides = [1, 1]} : vector<18x64xf32> to vector<16x64xf32>
    %c3 = arith.constant 3 : index
    %c0_10 = arith.constant 0 : index
    %c0_11 = arith.constant 0 : index
    %14 = vector.load %arg2[%c3, %c0_10, %c0_11] : memref<9x16x64xf32, #tpu.memory_space<vmem>>, vector<1x16x64xf32>
    %15 = vector.shape_cast %14 : vector<1x16x64xf32> to vector<16x64xf32>
    %16 = arith.mulf %13, %15 : vector<16x64xf32>
    %17 = arith.addf %12, %16 : vector<16x64xf32>
    %18 = vector.extract_strided_slice %7 {offsets = [2, 0], sizes = [16, 64], strides = [1, 1]} : vector<18x64xf32> to vector<16x64xf32>
    %c6 = arith.constant 6 : index
    %c0_12 = arith.constant 0 : index
    %c0_13 = arith.constant 0 : index
    %19 = vector.load %arg2[%c6, %c0_12, %c0_13] : memref<9x16x64xf32, #tpu.memory_space<vmem>>, vector<1x16x64xf32>
    %20 = vector.shape_cast %19 : vector<1x16x64xf32> to vector<16x64xf32>
    %21 = arith.mulf %18, %20 : vector<16x64xf32>
    %22 = arith.addf %17, %21 : vector<16x64xf32>
    %23 = vector.extract_strided_slice %5 {offsets = [0, 4], sizes = [18, 64], strides = [1, 1]} : vector<18x72xf32> to vector<18x64xf32>
    %24 = vector.extract_strided_slice %23 {offsets = [0, 0], sizes = [16, 64], strides = [1, 1]} : vector<18x64xf32> to vector<16x64xf32>
    %c1_14 = arith.constant 1 : index
    %c0_15 = arith.constant 0 : index
    %c0_16 = arith.constant 0 : index
    %25 = vector.load %arg2[%c1_14, %c0_15, %c0_16] : memref<9x16x64xf32, #tpu.memory_space<vmem>>, vector<1x16x64xf32>
    %26 = vector.shape_cast %25 : vector<1x16x64xf32> to vector<16x64xf32>
    %27 = arith.mulf %24, %26 : vector<16x64xf32>
    %28 = arith.addf %22, %27 : vector<16x64xf32>
    %29 = vector.extract_strided_slice %23 {offsets = [1, 0], sizes = [16, 64], strides = [1, 1]} : vector<18x64xf32> to vector<16x64xf32>
    %c4_17 = arith.constant 4 : index
    %c0_18 = arith.constant 0 : index
    %c0_19 = arith.constant 0 : index
    %30 = vector.load %arg2[%c4_17, %c0_18, %c0_19] : memref<9x16x64xf32, #tpu.memory_space<vmem>>, vector<1x16x64xf32>
    %31 = vector.shape_cast %30 : vector<1x16x64xf32> to vector<16x64xf32>
    %32 = arith.mulf %29, %31 : vector<16x64xf32>
    %33 = arith.addf %28, %32 : vector<16x64xf32>
    %34 = vector.extract_strided_slice %23 {offsets = [2, 0], sizes = [16, 64], strides = [1, 1]} : vector<18x64xf32> to vector<16x64xf32>
    %c7 = arith.constant 7 : index
    %c0_20 = arith.constant 0 : index
    %c0_21 = arith.constant 0 : index
    %35 = vector.load %arg2[%c7, %c0_20, %c0_21] : memref<9x16x64xf32, #tpu.memory_space<vmem>>, vector<1x16x64xf32>
    %36 = vector.shape_cast %35 : vector<1x16x64xf32> to vector<16x64xf32>
    %37 = arith.mulf %34, %36 : vector<16x64xf32>
    %38 = arith.addf %33, %37 : vector<16x64xf32>
    %39 = vector.extract_strided_slice %5 {offsets = [0, 8], sizes = [18, 64], strides = [1, 1]} : vector<18x72xf32> to vector<18x64xf32>
    %40 = vector.extract_strided_slice %39 {offsets = [0, 0], sizes = [16, 64], strides = [1, 1]} : vector<18x64xf32> to vector<16x64xf32>
    %c2 = arith.constant 2 : index
    %c0_22 = arith.constant 0 : index
    %c0_23 = arith.constant 0 : index
    %41 = vector.load %arg2[%c2, %c0_22, %c0_23] : memref<9x16x64xf32, #tpu.memory_space<vmem>>, vector<1x16x64xf32>
    %42 = vector.shape_cast %41 : vector<1x16x64xf32> to vector<16x64xf32>
    %43 = arith.mulf %40, %42 : vector<16x64xf32>
    %44 = arith.addf %38, %43 : vector<16x64xf32>
    %45 = vector.extract_strided_slice %39 {offsets = [1, 0], sizes = [16, 64], strides = [1, 1]} : vector<18x64xf32> to vector<16x64xf32>
    %c5 = arith.constant 5 : index
    %c0_24 = arith.constant 0 : index
    %c0_25 = arith.constant 0 : index
    %46 = vector.load %arg2[%c5, %c0_24, %c0_25] : memref<9x16x64xf32, #tpu.memory_space<vmem>>, vector<1x16x64xf32>
    %47 = vector.shape_cast %46 : vector<1x16x64xf32> to vector<16x64xf32>
    %48 = arith.mulf %45, %47 : vector<16x64xf32>
    %49 = arith.addf %44, %48 : vector<16x64xf32>
    %50 = vector.extract_strided_slice %39 {offsets = [2, 0], sizes = [16, 64], strides = [1, 1]} : vector<18x64xf32> to vector<16x64xf32>
    %c8 = arith.constant 8 : index
    %c0_26 = arith.constant 0 : index
    %c0_27 = arith.constant 0 : index
    %51 = vector.load %arg2[%c8, %c0_26, %c0_27] : memref<9x16x64xf32, #tpu.memory_space<vmem>>, vector<1x16x64xf32>
    %52 = vector.shape_cast %51 : vector<1x16x64xf32> to vector<16x64xf32>
    %53 = arith.mulf %50, %52 : vector<16x64xf32>
    %54 = arith.addf %49, %53 : vector<16x64xf32>
    %55 = arith.truncf %54 : vector<16x64xf32> to vector<16x64xbf16>
    %c0_28 = arith.constant 0 : index
    %c0_29 = arith.constant 0 : index
    %56 = vector.load %arg3[%c0_28, %c0_29] : memref<64x128xbf16, #tpu.memory_space<vmem>>, vector<64x128xbf16>
    %cst_30 = arith.constant dense<0.000000e+00> : vector<16x128xf32>
    %57 = tpu.matmul %55, %56, %cst_30 {dimension_numbers = #tpu.dot_dimension_numbers<[1], [0], [0], [1], [0, 0, 1, 1], [], []>} : vector<16x64xbf16>, vector<64x128xbf16>, vector<16x128xf32> -> vector<16x128xf32>
    %c0_31 = arith.constant 0 : index
    %c0_32 = arith.constant 0 : index
    %58 = vector.load %arg4[%c0_31, %c0_32] : memref<1x128xf32, #tpu.memory_space<vmem>>, vector<1x128xf32>
    %59 = vector.broadcast %58 : vector<1x128xf32> to vector<16x128xf32>
    %60 = arith.addf %57, %59 : vector<16x128xf32>
    %cst_33 = arith.constant 0.000000e+00 : f32
    %cst_34 = arith.constant 6.000000e+00 : f32
    %61 = vector.broadcast %cst_33 : f32 to vector<16x128xf32>
    %62 = arith.maximumf %61, %60 : vector<16x128xf32>
    %63 = vector.broadcast %cst_34 : f32 to vector<16x128xf32>
    %64 = arith.minimumf %63, %62 : vector<16x128xf32>
    %c0_35 = arith.constant 0 : index
    %c0_36 = arith.constant 0 : index
    %c0_37 = arith.constant 0 : index
    %65 = vector.load %arg5[%c0_35, %c0_36, %c0_37] : memref<1x16x128xf32, #tpu.memory_space<vmem>>, vector<1x16x128xf32>
    %66 = vector.shape_cast %65 : vector<1x16x128xf32> to vector<16x128xf32>
    %67 = vector.shape_cast %64 : vector<16x128xf32> to vector<1x16x128xf32>
    tpu.vector_store %arg5[%c0_35, %c0_36, %c0_37], %67 {strides = array<i32>} : memref<1x16x128xf32, #tpu.memory_space<vmem>>, vector<1x16x128xf32>,
    return
  }
  func.func @transform_0(%arg0: i32) -> (i32, i32, i32) {
    %c0_i32 = arith.constant 0 : i32
    %c0_i32_0 = arith.constant 0 : i32
    %c0_i32_1 = arith.constant 0 : i32
    return %arg0, %c0_i32, %c0_i32_0 : i32, i32, i32
  }
  func.func @transform_1(%arg0: i32) -> (i32, i32, i32) {
    %c0_i32 = arith.constant 0 : i32
    %c0_i32_0 = arith.constant 0 : i32
    %c0_i32_1 = arith.constant 0 : i32
    %c0_i32_2 = arith.constant 0 : i32
    return %c0_i32, %c0_i32_0, %c0_i32_1 : i32, i32, i32
  }
  func.func @transform_2(%arg0: i32) -> (i32, i32) {
    %c0_i32 = arith.constant 0 : i32
    %c0_i32_0 = arith.constant 0 : i32
    %c0_i32_1 = arith.constant 0 : i32
    return %c0_i32, %c0_i32_0 : i32, i32
  }
  func.func @transform_3(%arg0: i32) -> (i32, i32) {
    %c0_i32 = arith.constant 0 : i32
    %c0_i32_0 = arith.constant 0 : i32
    %c0_i32_1 = arith.constant 0 : i32
    return %c0_i32, %c0_i32_0 : i32, i32
  }
  func.func @transform_4(%arg0: i32) -> (i32, i32, i32) {
    %c0_i32 = arith.constant 0 : i32
    %c0_i32_0 = arith.constant 0 : i32
    %c0_i32_1 = arith.constant 0 : i32
    return %arg0, %c0_i32, %c0_i32_0 : i32, i32, i32
  }
}

</mosaic_0001>

<bundles_post_ra>
// kernel: tpu_custom_call.1
= control target key start
LH: loop header
LB: loop body
LE: loop exit
PB: predicated region body
PF: predicated region fallthrough
CT: control target
= control target key end

     0   :  { %9 = vsyncpa [#allocation4], 0  ;;  %s1369_s0 = inlined_call_operand.hbm [shape: f32[2,16,64], index: 0, kind: input, shape index: {}]   ;;  %s1370_s1 = inlined_call_operand.hbm [shape: f32[9,16,64], index: 1, kind: input, shape index: {}]   ;;  %s1371_s2 = inlined_call_operand.hbm [shape: bf16[64,128], index: 2, kind: input, shape index: {}]   ;;  %s1372_s3 = inlined_call_operand.vmem [shape: f32[1,128], index: 3, kind: input, shape index: {}]   ;;  %s1373_s4 = inlined_call_operand.hbm [shape: f32[2,16,128], index: 4, kind: output, shape index: {}]  }
   0x1   :  { %11 = vsyncpa [#allocation4 + $0x1], 0 }
   0x2   :  { %12 = vsyncpa [#allocation7], 0 }
   0x3   :  { %13 = vsyncpa [#allocation5], 0 }
   0x4   :  { %15 = vsyncpa [#allocation5 + $0x1], 0  ;;  %s1039_s15 = smov 0   ;;  %s1041_s16 = smov 0  }
   0x5   :  { %s1043_s17 = smov 0   ;;  %s1045_s18 = smov 0  }
   0x6 LB: > { %s1060_s19 = sadd.s32 4294967295, %s997_s18   ;;  %s716_s20 = sadd.s32 4294967294, %s997_s18   ;;  %s997_s18 = sphi %s1045_s18, %s1393_s18   ;;  %s993_s17 = sphi %s1043_s17, %s1392_s17   ;;  %s989_s16 = sphi %s1041_s16, %s1391_s16   ;;  %s985_s15 = sphi %s1039_s15, %s1390_s15  }
   0x7   : > { %p41_p0 = scmp.ne.s32.totalorder %s989_s16, %s985_s15  ;;  %p1374_p1 = scmp.eq.s32.totalorder %s1060_s19, 0 }
   0x8   : > { %p134_p3 = scmp.eq.s32.totalorder %s716_s20, 1  ;;  %p717_p5 = scmp.ge.s32.totalorder %s997_s18, 1 }
   0x9   : > { %p1069_p4 = por %p1374_p1, %p41_p0  ;;  %p141_p7 = scmp.lt.s32.totalorder %s997_s18, 3 }
   0xa   : > { %p1074_p6 = por %p134_p3, %p41_p0  ;;  %s999_s24 = smov [#allocation6]  }
   0xb   : > { %s1377_s21 = scalar_select %p1069_p4, 1, 0 }
   0xc   : > { %s1378_s22 = scalar_select %p1074_p6, 1, 0 }
   0xd   : > { %p1079_p8 = pnand %p717_p5, %p141_p7  ;;  %s153_s25 = sshll.u32 %s999_s24, 4  ;;  %s1083_s25 = int_to_ptr.vmem [resolvable:$true] %s153_s25 }
   0xe   : > { %s1000_s27 = smov [#allocation8]   ;;  %s841_s5 = scalar_lea.hbm %s1370_s1, 2304 }
   0xf   : > { %p771_p9 = pneg %p1079_p8  ;;  %s166_s28 = sshll.u32 %s1000_s27, 4  ;;  %s1094_s28 = int_to_ptr.vmem [resolvable:$true] %s166_s28 }
  0x10   : > { %p842_p12 = scmp.ne.s32.totalorder %s1370_s1, %s841_s5  ;;  %p848_p5 = scmp.lt.u32.totalorder %s841_s5, %s1370_s1 }
  0x11   : > { %p1090_p11 = pnand %p771_p9, %p1374_p1 }
  0x13   : > { %p843_p13 = pneg %p1090_p11 }
  0x15   : > { %p844_p0 = pnand %p843_p13, %p842_p12 }
  0x17   : > { %p845_p3 = pneg %p844_p0 }
  0x19   : > { %p850_p7 = pnand %p848_p5, %p845_p3 }
  0x1b   : > { %853 = shalt.err (!%p850_p7)
}
  0x1c   : > { %s854_s10 = scalar_lea.vmem %s1083_s25, 2304  ;;  %p862_p2 = scmp.lt.s32.totalorder %s1083_s25, %s1083_s25 }
  0x1d   : > { %p855_p9 = scmp.ne.s32.totalorder %s1083_s25, %s854_s10  ;;  %p863_p12 = scmp.lt.s32.totalorder %s854_s10, %s854_s10 }
  0x1f   : > { %p857_p10 = pnand %p855_p9, %p843_p13  ;;  %p864_p0 = por %p863_p12, %p862_p2 }
  0x21   : > { %p858_p1 = pneg %p857_p10 }
  0x23   : > { %p865_p6 = pnand %p864_p0, %p858_p1 }
  0x25   : > { %868 = shalt.err (!%p865_p6)
}
  0x26   : > { %s1001_s11 = smov 128   ;;  %s1002_s12 = smov 8  }
  0x27   : > { %774 = dma.hbm_to_vmem [thread:$0]  (!%p1090_p11), %s1370_s1, 2304, %s1083_s25, [#allocation7], %s1001_s11, %s1001_s11, %s1002_s12  }
  0x28   : > { %s869_s27 = scalar_lea.hbm %s1371_s2, 512 }
  0x29   : > { %p870_p1 = scmp.ne.s32.totalorder %s1371_s2, %s869_s27  ;;  %p876_p10 = scmp.lt.u32.totalorder %s869_s27, %s1371_s2 }
  0x2b   : > { %p872_p2 = pnand %p870_p1, %p843_p13 }
  0x2d   : > { %p873_p6 = pneg %p872_p2 }
  0x2f   : > { %p878_p3 = pnand %p876_p10, %p873_p6 }
  0x31   : > { %881 = shalt.err (!%p878_p3)
}
  0x32   : > { %s882_s25 = scalar_lea.vmem %s1094_s28, 512  ;;  %p890_p12 = scmp.lt.s32.totalorder %s1094_s28, %s1094_s28 }
  0x33   : > { %p883_p5 = scmp.ne.s32.totalorder %s1094_s28, %s882_s25  ;;  %p891_p0 = scmp.lt.s32.totalorder %s882_s25, %s882_s25 }
  0x35   : > { %p885_p7 = pnand %p883_p5, %p843_p13  ;;  %p892_p1 = por %p891_p0, %p890_p12 }
  0x37   : > { %p886_p9 = pneg %p885_p7 }
  0x39   : > { %p893_p2 = pnand %p892_p1, %p886_p9 }
  0x3b   : > { %896 = shalt.err (!%p893_p2)
}
  0x3c   : > { %s1003_s7 = smov 64   ;;  %s1004_s8 = smov 4  }
  0x3d   : > { %777 = dma.hbm_to_vmem [thread:$0]  (!%p1090_p11), %s1371_s2, 512, %s1094_s28, [#allocation7], %s1003_s7, %s1003_s7, %s1004_s8  }
  0x3e   : > { %s1152_s13 = sadd.s32 1, %s997_s18   ;;  %s28_s20 = sadd.s32 1, %s993_s17 }
  0x3f   : > { %s25_s14 = ssub.s32 %s997_s18, %s1152_s13  ;;  %p35_p6 = scmp.ne.s32.totalorder %s993_s17, %s989_s16 }
  0x40   : > { %p26_p13 = scmp.eq.s32.totalorder %s25_s14, 0  ;;  %p36_p10 = scmp.eq.s32.totalorder %s997_s18, 0 }
  0x41   : > { %p1381_p5 = scmp.eq.s32.totalorder %s1060_s19, 1  ;;  %p788_p9 = scmp.lt.s32.totalorder %s997_s18, 2 }
  0x42   : > { %s1161_s24 = scalar_select %p26_p13, %s993_s17, %s28_s20  }
  0x43   : > { %p37_p3 = por %p36_p10, %p35_p6  ;;  %p1165_p7 = por %p1381_p5, %p35_p6 }
  0x44   : > { %s183_s26 = sand.u32 1, %s993_s17   ;;  %s740_s28 = sshll.u32 %s997_s18, 8 }
  0x45   : > { %s1382_s27 = scalar_select %p1165_p7, 1, 0 }
  0x46   : > { %s721_s29 = sshll.u32 %s183_s26, 4  ;;  %s1175_s6 = scalar_lea.hbm %s1369_s0, %s740_s28 }
  0x47   : > { %s187_s25 = scalar_lea.vmem [#allocation3], %s721_s29  ;;  %p1179_p11 = pnand %p788_p9, %p37_p3 }
  0x48   : > { %s194_s7 = sshll.u32 %s187_s25, 4  ;;  %s1183_s9 = scalar_lea.sflag [#allocation4], %s183_s26  ;;  %s1177_s7 = int_to_ptr.vmem [resolvable:$true] %s194_s7 }
  0x49   : > { %s897_s10 = scalar_lea.hbm %s1175_s6, 256  ;;  %p899_p0 = pneg %p1179_p11 }
  0x4a   : > { %p898_p12 = scmp.ne.s32.totalorder %s1175_s6, %s897_s10  ;;  %s902_s29 = scalar_lea.hbm %s1369_s0, 512 }
  0x4b   : > { %p903_p13 = scmp.lt.u32.totalorder %s1175_s6, %s1369_s0  ;;  %p904_p6 = scmp.lt.u32.totalorder %s902_s29, %s897_s10 }
  0x4c   : > { %p900_p1 = pnand %p899_p0, %p898_p12  ;;  %p906_p3 = scmp.lt.u32.totalorder %s897_s10, %s1175_s6 }
  0x4d   : > { %p905_p10 = por %p904_p6, %p903_p13 }
  0x4e   : > { %p901_p2 = pneg %p900_p1 }
  0x4f   : > { %p907_p5 = por %p906_p3, %p905_p10 }
  0x51   : > { %p908_p9 = pnand %p907_p5, %p901_p2 }
  0x53   : > { %911 = shalt.err (!%p908_p9)
}
  0x54   : > { %s912_s26 = scalar_lea.vmem %s1177_s7, 256  ;;  %s1005_s5 = smov [#allocation3]  }
  0x55   : > { %p913_p12 = scmp.ne.s32.totalorder %s1177_s7, %s912_s26  ;;  %s917_s25 = sshll.u32 %s1005_s5, 4  ;;  %s918_s25 = int_to_ptr.vmem [resolvable:$false] %s917_s25 }
  0x56   : > { %s919_s14 = scalar_lea.vmem %s918_s25, 512  ;;  %p920_p4 = scmp.lt.s32.totalorder %s1177_s7, %s918_s25 }
  0x57   : > { %p915_p1 = pnand %p913_p12, %p899_p0  ;;  %p921_p13 = scmp.lt.s32.totalorder %s919_s14, %s912_s26 }
  0x59   : > { %p916_p7 = pneg %p915_p1  ;;  %p922_p6 = por %p921_p13, %p920_p4 }
  0x5b   : > { %p923_p10 = pnand %p922_p6, %p916_p7 }
  0x5d   : > { %926 = shalt.err (!%p923_p10)
}
  0x5e   : > { %781 = dma.hbm_to_vmem [thread:$0]  (!%p1179_p11), %s1175_s6, 256, %s1177_s7, %s1183_s9, %s1001_s11, %s1001_s11, %s1002_s12  }
  0x5f   : > { %206 = sbr.rel (%p1079_p8) target bundleno = 623 (0x26f), region = 36  ;;  %s1217_s10 = sand.u32 (!%p1079_p8), 1, %s989_s16  }
  0x60   : > { %s725_s20 = sshll.u32 (!%p1079_p8), %s1217_s10, 4  ;;  %s209_s29 = scalar_lea.sflag (!%p1079_p8), [#allocation4], %s1217_s10 }
  0x61   : > { %s212_s8 = scalar_lea.vmem (!%p1079_p8), [#allocation3], %s725_s20  ;;  %p1384_p4 = scmp.ne.s32.totalorder (!%p1079_p8), %s1377_s21, 0 }
  0x66   : > { %972 = dma.done.wait (%p1384_p4), %s209_s29, 256  }
  0x67   : > { %974 = vsyncadd (%p1384_p4), %s209_s29, 4294967040  ;;  %p1385_p7 = scmp.eq.s32.totalorder %s1060_s19, 0 }
  0x69   : > { %976 = dma.done.wait (%p1385_p7), [#allocation7], 2816   ;;  %p1386_p8 = pmov %p1385_p7 }
  0x6a   : > { %vm246_vm0 = vcmask 588800   ;;  %vm249_vm1 = vcmask 582656   ;;  %v1006_v0 = vmov 0.0   ;;  %v330_v1 = vld [vmem:[#allocation6 + $0x10] sm:$0xff]  ;;  %v353_v3 = vld [vmem:[#allocation6 + $0x40] sm:$0xff]  ;;  %s1007_s21 = smov 4  }
  0x6b   : > { %978 = vsyncadd (%p1386_p8), [#allocation7], 4294964480  ;;  %247 = vst.msk [vmem:[#allocation2] sm:$0xff] %vm246_vm0, %v1006_v0  ;;  %747 = vmatprep.subr.bf16.mxu0 %v1006_v0  ;;  %v251_v2 = vld [vmem:[%s212_s8] sm:$0xff]  ;;  %334 = vrot.lane.b32.xlu1 %v330_v1, %s1007_s21  ;;  %v357_v4 = vrot.slane %v353_v3, 7  ;;  %v354_v5 = vld [vmem:[#allocation6 + $0x48] sm:$0xff] }
  0x6c   : > { %248 = vst.msk [vmem:[#allocation2 + $0x8] sm:$0xff] %vm246_vm0, %v1006_v0  ;;  %255 = vrot.lane.b32.xlu0 %v251_v2, %s1007_s21  ;;  %v252_v6 = vld [vmem:[%s212_s8 + $0x8] sm:$0xff]  ;;  %v358_v7 = vrot.slane %v354_v5, 7  ;;  %vm278_vm2 = vcmask 1040384   ;;  %v389_v9 = vld [vmem:[#allocation6 + $0x70] sm:$0xff]  ;;  %vm306_vm3 = vcmask 1041408  }
  0x6d   : > { %250 = vst.msk [vmem:[#allocation2 + $0x10] sm:$0x3] %vm249_vm1, %v1006_v0  ;;  %v390_v10 = vld [vmem:[#allocation6 + $0x78] sm:$0xff]  ;;  %v393_v11 = vrot.slane %v389_v9, 6  ;;  %v448_v14 = vld [vmem:[#allocation6 + $0x50] sm:$0xff]  ;;  %s1008_s23 = smov 8  }
  0x6e   : > { %v359_v8 = vsel %vm278_vm2, %v357_v4, %v358_v7  ;;  %v331_v12 = vld [vmem:[#allocation6 + $0x18] sm:$0xff]  ;;  %v394_v13 = vrot.slane %v390_v10, 6  ;;  %v452_v17 = vrot.slane %v448_v14, 7  ;;  %v425_v20 = vld [vmem:[#allocation6 + $0x20] sm:$0xff]  ;;  %v485_v22 = vld [vmem:[#allocation6 + $0x88] sm:$0xff]  ;;  %vm261_vm4 = vcmask 556064  }
  0x6f   : > { %360 = vrot.lane.b32.xlu1 %v357_v4, %s1007_s21  ;;  %v449_v15 = vld [vmem:[#allocation6 + $0x58] sm:$0xff]  ;;  %v484_v21 = vld [vmem:[#allocation6 + $0x80] sm:$0xff]  ;;  %v426_v24 = vld [vmem:[#allocation6 + $0x28] sm:$0xff]  ;;  %v489_v25 = vrot.slane %v485_v22, 6  ;;  %s1009_s11 = smov 124   ;;  %vm291_vm5 = vcmask 1046528  }
  0x70   : > { %257 = vrot.lane.b32.xlu0 %v252_v6, %s1007_s21  ;;  %v395_v16 = vsel %vm306_vm3, %v393_v11, %v394_v13  ;;  %v453_v18 = vrot.slane %v449_v15, 7  ;;  %v488_v23 = vrot.slane %v484_v21, 6  ;;  %v274_v29 = vld [vmem:[#allocation6 + $0x30] sm:$0xff]  ;;  %v275_v30 = vld [vmem:[#allocation6 + $0x38] sm:$0xff]  ;;  %v302_v31 = vld [vmem:[#allocation6 + $0x60] sm:$0xff]  ;;  %vm319_vm6 = vcmask 1045504  }
  0x71   : > { %v303_v32 = vld [vmem:[#allocation6 + $0x68] sm:$0xff]  ;;  %v279_v35 = vrot.slane %v274_v29, 7  ;;  %v280_v36 = vrot.slane %v275_v30, 7  ;;  %v307_v37 = vrot.slane %v302_v31, 6  ;;  %v267_v52 = vld [vmem:[#allocation6] sm:$0xff]  ;;  %s1010_s12 = smov 120  }
  0x72   : > { %v454_v19 = vsel %vm278_vm2, %v452_v17, %v453_v18  ;;  %v490_v26 = vsel %vm306_vm3, %v488_v23, %v489_v25  ;;  %v308_v38 = vrot.slane %v303_v32, 6  ;;  %v268_v55 = vld [vmem:[#allocation6 + $0x8] sm:$0xff]  ;;  %vm1011_vm7 = vmmov 0   ;;  %s244_s9 = scalar_lea.vmem [#allocation9], %s725_s20  ;;  %s741_s30 = sshll.u32 %s1060_s19, 8 }
  0x73   : > { %362 = vrot.lane.b32.xlu1 %v359_v8, %s1007_s21  ;;  %v281_v43 = vsel %vm278_vm2, %v279_v35, %v280_v36  ;;  %755 = vmatprep.mubr.msk.bf16.mxu0 %vm1011_vm7, %v1006_v0  ;;  %vm559_vm8 = vcmask 523264   ;;  %s624_s28 = sshll.u32 %s244_s9, 4  ;;  %s1324_s25 = scalar_lea.hbm %s1373_s4, %s741_s30  ;;  %s1319_s28 = int_to_ptr.vmem [resolvable:$true] %s624_s28 }
  0x74   : > { %364 = vrot.lane.b32.xlu0 %v358_v7, %s1007_s21  ;;  %v309_v44 = vsel %vm306_vm3, %v307_v37, %v308_v38  ;;  %s611_s14 = scalar_lea.sflag [#allocation5], %s1217_s10  ;;  %s927_s20 = scalar_lea.vmem %s1319_s28, 256 }
  0x75   : > { %p928_p11 = scmp.ne.s32.totalorder %s1319_s28, %s927_s20  ;;  %p1387_p0 = scmp.ne.s32.totalorder %s1382_s27, 0 }
  0x76   : > { %s1012_s19 = smov [#allocation9]  }
  0x77   : > { %396 = vrot.lane.b32.xlu1 %v393_v11, %s1007_s21  ;;  %p929_p2 = pnand %p928_p11, %p1387_p0  ;;  %s931_s29 = sshll.u32 %s1012_s19, 4  ;;  %s932_s29 = int_to_ptr.vmem [resolvable:$false] %s931_s29 }
  0x78   : > { %336 = vrot.lane.b32.xlu0 %v331_v12, %s1007_s21  ;;  %s933_s8 = scalar_lea.vmem %s932_s29, 512  ;;  %p934_p5 = scmp.lt.s32.totalorder %s1319_s28, %s932_s29 }
  0x79   : > { %p930_p3 = pneg %p929_p2  ;;  %p935_p9 = scmp.lt.s32.totalorder %s933_s8, %s927_s20 }
  0x7b   : > { %400 = vrot.lane.b32.xlu1 %v394_v13, %s1007_s21  ;;  %p936_p12 = por %p935_p9, %p934_p5 }
  0x7c   : > { %398 = vrot.lane.b32.xlu0 %v395_v16, %s1007_s21  ;;  %v837_v16 = vld [vmem:[#allocation8] sm:$0xff]  }
  0x7d   : > { %748 = vmatpush3.bf16.msra.mxu0 %v837_v16  ;;  %p937_p1 = pnand %p936_p12, %p930_p3 }
  0x7e   : > { %749 = vmatprep.subr.bf16.mxu0 %v1006_v0 }
  0x7f   : > { %457 = vrot.lane.b32.xlu1 %v454_v19, %s1008_s23 }
  0x80   : > { %455 = vrot.lane.b32.xlu0 %v452_v17, %s1008_s23 }
  0x83   : > { %429 = vrot.lane.b32.xlu1 %v425_v20, %s1008_s23 }
  0x84   : > { %459 = vrot.lane.b32.xlu0 %v453_v18, %s1008_s23 }
  0x87   : > { %491 = vrot.lane.b32.xlu1 %v488_v23, %s1008_s23 }
  0x88   : > { %431 = vrot.lane.b32.xlu0 %v426_v24, %s1008_s23  ;;  %v838_v24 = vld [vmem:[#allocation8 + $0x8] sm:$0xff]  }
  0x89   : > { %750 = vmatpush3.bf16.msra.mxu0 %v838_v24 }
  0x8a   : > { %751 = vmatprep.subr.bf16.mxu0 %v1006_v0 }
  0x8b   : > { %495 = vrot.lane.b32.xlu1 %v489_v25, %s1008_s23 }
  0x8c   : > { %493 = vrot.lane.b32.xlu0 %v490_v26, %s1008_s23 }
  0xdd   : > { %v335_v27 = vpop.permute.xlu1 %334 }
  0xde   : > { %v256_v28 = vpop.permute.xlu0 %255 }
  0xdf   : > { %262 = vst.msk [vmem:[#allocation2 + $0x1] sm:$0xff] %vm261_vm4, %v256_v28 }
  0xe1   : > { %v361_v33 = vpop.permute.xlu1 %360 }
  0xe2   : > { %v258_v34 = vpop.permute.xlu0 %257 }
  0xe3   : > { %263 = vst.msk [vmem:[#allocation2 + $0x9] sm:$0xff] %vm261_vm4, %v258_v34 }
  0xe5   : > { %v363_v40 = vpop.permute.xlu1 %362 }
  0xe6   : > { %v1247_v39 = vld [vmem:[#allocation2] sm:$0xff]  ;;  %v365_v41 = vpop.permute.xlu0 %364 }
  0xe7   : > { %v340_v42 = vmul.f32 %v335_v27, %v1247_v39  ;;  %v285_v45 = vmul.f32 %v279_v35, %v1247_v39  ;;  %v313_v46 = vmul.f32 %v307_v37, %v1247_v39  ;;  %v269_v3 = vmul.f32 %v267_v52, %v1247_v39 }
  0xe8   : > { %v369_v17 = vmul.f32 %v361_v33, %v1247_v39 }
  0xe9   : > { %344 = vrot.lane.b32.xlu0 %v340_v42, %s1009_s11  ;;  %v397_v49 = vpop.permute.xlu1 %396  ;;  %v292_v58 = vrot.slane %v285_v45, 1  ;;  %v320_v59 = vrot.slane %v313_v46, 2 }
  0xea   : > { %v1255_v47 = vld [vmem:[#allocation2 + $0x8] sm:$0xff]  ;;  %v1257_v48 = vld [vmem:[#allocation2 + $0x10] sm:$0x3]  ;;  %v337_v50 = vpop.permute.xlu0 %336  ;;  %v405_v25 = vmul.f32 %v397_v49, %v1247_v39  ;;  %v375_v26 = vrot.slane %v369_v17, 1 }
  0xeb   : > { %v341_v51 = vmul.f32 %v337_v50, %v1255_v47  ;;  %v286_v53 = vmul.f32 %v281_v43, %v1255_v47  ;;  %v314_v54 = vmul.f32 %v309_v44, %v1255_v47  ;;  %v287_v56 = vmul.f32 %v280_v36, %v1257_v48  ;;  %v839_v36 = vld [vmem:[#allocation8 + $0x10] sm:$0xff]   ;;  %v840_v50 = vld [vmem:[#allocation8 + $0x18] sm:$0xff]  }
  0xec   : > { %v315_v57 = vmul.f32 %v308_v38, %v1257_v48  ;;  %v270_v4 = vmul.f32 %v268_v55, %v1255_v47  ;;  %v370_v13 = vmul.f32 %v363_v40, %v1255_v47  ;;  %v371_v20 = vmul.f32 %v365_v41, %v1257_v48  ;;  %752 = vmatpush3.bf16.msra.mxu0 %v839_v36 }
  0xed   : > { %346 = vrot.lane.b32.xlu1 %v341_v51, %s1009_s11  ;;  %v401_v60 = vpop.permute.xlu1 %400  ;;  %v293_v62 = vrot.slane %v286_v53, 1  ;;  %v321_v63 = vrot.slane %v314_v54, 2  ;;  %v295_v1 = vrot.slane %v287_v56, 1  ;;  %v411_v37 = vrot.slane %v405_v25, 2  ;;  %753 = vmatprep.subr.bf16.mxu0 %v1006_v0 }
  0xee   : > { %v399_v61 = vpop.permute.xlu0 %398  ;;  %v323_v2 = vrot.slane %v315_v57, 2  ;;  %v376_v23 = vrot.slane %v370_v13, 1  ;;  %v378_v28 = vrot.slane %v371_v20, 1  ;;  %v407_v29 = vmul.f32 %v401_v60, %v1257_v48 }
  0xef   : > { %v294_v5 = vsel %vm291_vm5, %v292_v58, %v293_v62  ;;  %v322_v6 = vsel %vm319_vm6, %v320_v59, %v321_v63  ;;  %v296_v7 = vsel %vm291_vm5, %v293_v62, %v295_v1  ;;  %v406_v21 = vmul.f32 %v399_v61, %v1255_v47 }
  0xf0   : > { %v324_v8 = vsel %vm319_vm6, %v321_v63, %v323_v2  ;;  %v299_v9 = vadd.f32 %v294_v5, %v269_v3  ;;  %v300_v10 = vadd.f32 %v296_v7, %v270_v4  ;;  %v377_v35 = vsel %vm291_vm5, %v375_v26, %v376_v23  ;;  %754 = vmatpush3.bf16.msra.mxu0 %v840_v50 }
  0xf1   : > { %v458_v11 = vpop.permute.xlu1 %457  ;;  %v412_v30 = vrot.slane %v406_v21, 2  ;;  %v414_v40 = vrot.slane %v407_v29, 2  ;;  %v379_v41 = vsel %vm291_vm5, %v376_v23, %v378_v28 }
  0xf2   : > { %v456_v12 = vpop.permute.xlu0 %455  ;;  %v1272_v14 = vadd.f32 %v322_v6, %v299_v9  ;;  %v1274_v15 = vadd.f32 %v324_v8, %v300_v10  ;;  %v465_v33 = vmul.f32 %v458_v11, %v1255_v47 }
  0xf3   : > { %v464_v34 = vmul.f32 %v456_v12, %v1247_v39  ;;  %v413_v42 = vsel %vm319_vm6, %v411_v37, %v412_v30  ;;  %v415_v52 = vsel %vm319_vm6, %v412_v30, %v414_v40 }
  0xf4   : > { %v471_v43 = vrot.slane %v465_v33, 1 }
  0xf5   : > { %v430_v18 = vpop.permute.xlu1 %429  ;;  %v470_v44 = vrot.slane %v464_v34, 1 }
  0xf6   : > { %v460_v19 = vpop.permute.xlu0 %459  ;;  %v435_v22 = vmul.f32 %v430_v18, %v1247_v39 }
  0xf7   : > { %v466_v45 = vmul.f32 %v460_v19, %v1257_v48 }
  0xf8   : > { %439 = vrot.lane.b32.xlu0 %v435_v22, %s1010_s12 }
  0xf9   : > { %v492_v31 = vpop.permute.xlu1 %491  ;;  %v473_v53 = vrot.slane %v466_v45, 1 }
  0xfa   : > { %v432_v27 = vpop.permute.xlu0 %431  ;;  %v500_v51 = vmul.f32 %v492_v31, %v1247_v39 }
  0xfb   : > { %v436_v32 = vmul.f32 %v432_v27, %v1255_v47  ;;  %v474_v39 = vsel %vm291_vm5, %v471_v43, %v473_v53 }
  0xfc   : > { %380 = vrot.lane.b32.xlu0 %v377_v35, %s1009_s11  ;;  %v506_v56 = vrot.slane %v500_v51, 2 }
  0xfd   : > { %441 = vrot.lane.b32.xlu1 %v436_v32, %s1010_s12  ;;  %v496_v49 = vpop.permute.xlu1 %495 }
  0xfe   : > { %v494_v38 = vpop.permute.xlu0 %493  ;;  %v502_v54 = vmul.f32 %v496_v49, %v1257_v48 }
  0xff   : > { %v501_v46 = vmul.f32 %v494_v38, %v1255_v47  ;;  %v472_v47 = vsel %vm291_vm5, %v470_v44, %v471_v43 }
 0x100   : > { %416 = vrot.lane.b32.xlu0 %v413_v42, %s1009_s11  ;;  %v509_v57 = vrot.slane %v502_v54, 2 }
 0x101   : > { %382 = vrot.lane.b32.xlu1 %v379_v41, %s1009_s11  ;;  %v507_v55 = vrot.slane %v501_v46, 2 }
 0x103   : > { %v508_v58 = vsel %vm319_vm6, %v506_v56, %v507_v55  ;;  %v510_v0 = vsel %vm319_vm6, %v507_v55, %v509_v57 }
 0x104   : > { %475 = vrot.lane.b32.xlu0 %v472_v47, %s1010_s12 }
 0x105   : > { %418 = vrot.lane.b32.xlu1 %v415_v52, %s1009_s11 }
 0x108   : > { %511 = vrot.lane.b32.xlu0 %v508_v58, %s1010_s12 }
 0x109   : > { %477 = vrot.lane.b32.xlu1 %v474_v39, %s1010_s12 }
 0x10d   : > { %513 = vrot.lane.b32.xlu1 %v510_v0, %s1010_s12 }
 0x15b   : > { %v345_v48 = vpop.permute.xlu0 %344 }
 0x15c   : > { %v350_v63 = vadd.f32 %v345_v48, %v1272_v14 }
 0x15f   : > { %v347_v59 = vpop.permute.xlu1 %346 }
 0x160   : > { %v351_v3 = vadd.f32 %v347_v59, %v1274_v15  ;;  %v729_v15 = vld [vmem:[%s1372_s3] ss:$0 sm:$0xff] }
 0x16a   : > { %v440_v60 = vpop.permute.xlu0 %439 }
 0x16e   : > { %v381_v62 = vpop.permute.xlu0 %380 }
 0x16f   : > { %v442_v61 = vpop.permute.xlu1 %441  ;;  %v386_v4 = vadd.f32 %v381_v62, %v350_v63 }
 0x172   : > { %v417_v2 = vpop.permute.xlu0 %416 }
 0x173   : > { %v383_v1 = vpop.permute.xlu1 %382  ;;  %v422_v6 = vadd.f32 %v417_v2, %v386_v4 }
 0x174   : > { %v387_v5 = vadd.f32 %v383_v1, %v351_v3 }
 0x175   : > { %v445_v10 = vadd.f32 %v440_v60, %v422_v6 }
 0x176   : > { %v476_v8 = vpop.permute.xlu0 %475 }
 0x177   : > { %v419_v7 = vpop.permute.xlu1 %418  ;;  %v481_v16 = vadd.f32 %v476_v8, %v445_v10 }
 0x178   : > { %v423_v9 = vadd.f32 %v419_v7, %v387_v5 }
 0x17a   : > { %v446_v11 = vadd.f32 %v442_v61, %v423_v9  ;;  %v512_v13 = vpop.permute.xlu0 %511 }
 0x17b   : > { %v478_v12 = vpop.permute.xlu1 %477  ;;  %v517_v14 = vadd.f32 %v512_v13, %v481_v16 }
 0x17c   : > { %v482_v17 = vadd.f32 %v478_v12, %v446_v11 }
 0x17f   : > { %v514_v18 = vpop.permute.xlu1 %513 }
 0x180   : > { %v518_v19 = vadd.f32 %v514_v18, %v482_v17 }
 0x182   : > { %v519_v20 = vpack.c.bf16 %v518_v19, %v517_v14 }
 0x184   : > { %756 = vmatmul.mubr.msk.bf16.vlgmr.msra.gmra.mrb[0].mxu0 %vm559_vm8, %v519_v20 }
 0x257   : > { %v597_v21 = vpop.f32.mrb[0].mxu0 }
 0x258   : > { %v598_v22 = vadd.f32 %v729_v15, %v597_v21  ;;  %v757_v23 = vpop.f32.mrb[1].mxu0 }
 0x259   : > { %v600_v24 = vpop.f32.mrb[2].mxu0 }
 0x25a   : > { %v604_v25 = vmax.f32 %v598_v22, 0.0  ;;  %v601_v26 = vadd.f32 %v729_v15, %v600_v24  ;;  %v758_v27 = vpop.f32.mrb[3].mxu0 }
 0x25c   : > { %v606_v28 = vmin.f32 %v604_v25, 6.0  ;;  %v605_v29 = vmax.f32 %v601_v26, 0.0 }
 0x25e   : > { %608 = vst [vmem:[%s244_s9] sm:$0xff] %v606_v28  ;;  %v607_v30 = vmin.f32 %v605_v29, 6.0 }
 0x260   : > { %609 = vst [vmem:[%s244_s9 + $0x8] sm:$0xff] %v607_v30 }
 0x261   : > { %940 = shalt.err (!%p937_p1)
}
 0x262   : > { %s941_s21 = scalar_lea.hbm %s1324_s25, 256  ;;  %s945_s6 = scalar_lea.hbm %s1373_s4, 512 }
 0x263   : > { %p942_p13 = scmp.ne.s32.totalorder %s1324_s25, %s941_s21  ;;  %p946_p4 = scmp.lt.u32.totalorder %s1324_s25, %s1373_s4 }
 0x264   : > { %p947_p7 = scmp.lt.u32.totalorder %s945_s6, %s941_s21  ;;  %p949_p11 = scmp.lt.u32.totalorder %s941_s21, %s1324_s25 }
 0x265   : > { %p943_p6 = pnand %p942_p13, %p1387_p0 }
 0x266   : > { %p948_p8 = por %p947_p7, %p946_p4 }
 0x267   : > { %p944_p10 = pneg %p943_p6 }
 0x268   : > { %p950_p2 = por %p949_p11, %p948_p8 }
 0x26a   : > { %p951_p3 = pnand %p950_p2, %p944_p10 }
 0x26c   : > { %954 = shalt.err (!%p951_p3)
}
 0x26d   : > { %s1013_s30 = smov 128  }
 0x26e   : > { %769 = dma.vmem_to_hbm [thread:$0]  (%p1387_p0), %s1319_s28, 256, %s1324_s25, %s611_s14, %s1013_s30, %s1013_s30, %s1008_s23  }
 0x26f PF: > { %s639_s26 = sand.u32 1, %s985_s15   ;;  %p1388_p5 = scmp.ne.s32.totalorder %s1378_s22, 0 }
 0x270   : > { %p1389_p9 = scmp.ge.s32.totalorder %s997_s18, 2  ;;  %s640_s5 = scalar_lea.sflag [#allocation5], %s639_s26 }
 0x272   : > { %p783_p12 = pnand %p1389_p9, %p1388_p5 }
 0x274   : > { %980 = dma.done.wait (!%p783_p12), %s640_s5, 256  }
 0x275   : > { %982 = vsyncadd (!%p783_p12), %s640_s5, 4294967040  ;;  %p18_p1 = scmp.ge.s32.totalorder %s1152_s13, 4   ;;  %s1390_s15 = smov %s989_s16 }
 0x276   : > { %s1391_s16 = smov %s993_s17  ;;  %s1392_s17 = smov %s1161_s24 }
 0x277   : > { %s1393_s18 = smov %s1152_s13  ;;  %20 = sbr.rel (!%p18_p1) target bundleno = 6 (0x6), region = 97 }
 0x27e   :  { %645 = vsyncpa [#allocation4], 1 }
 0x27f   :  { %647 = vsyncpa [#allocation4 + $0x1], 1 }
 0x280   :  { %648 = vsyncpa [#allocation7], 1 }
 0x281   :  { %649 = vsyncpa [#allocation5], 1 }
 0x282   :  { %651 = vsyncpa [#allocation5 + $0x1], 1 }

</bundles_post_ra>
